<compile_context>
chip_gen: v5e
topology: v5e:2x2
jax: 0.10.0
libtpu: 0.0.40
codegen_flags: <defaults>
</compile_context>

<pallas_src>
import jax
import jax.numpy as jnp
from jax.experimental import pallas as pl
from jax.experimental.pallas import tpu as pltpu


# --------------------------------------------------------------------------------------
# Generation-aware budgets
# --------------------------------------------------------------------------------------
def _vmem_capacity_bytes():
    try:
        cap = int(pltpu.get_tpu_info().vmem_capacity_bytes)
        if cap > 0:
            return cap
    except Exception:
        pass
    return 64 * 1024 * 1024  # conservative fallback (v7x-class)


def _budgets():
    """Returns (vmem_limit_bytes, per_step_x_block_budget, min_grid_steps, min_block_bytes).

    Block budget is expressed in f32-equivalent bytes of the x block per grid step.
    VMEM footprint per step ~= 2x(in + out) blocks (double-buffered, I/O dtype) plus a
    handful of f32-sized elementwise temporaries -> ~8x the f32-equivalent x block.
    """
    cap = _vmem_capacity_bytes()
    vmem_limit = min(int(cap * 3) // 4, 100 * 1024 * 1024)
    block_budget = max(512 * 1024, vmem_limit // 8)
    if cap <= 64 * 1024 * 1024:
        # v7x-class: 2 TensorCores + fast HBM -> need more steps AND bigger steps.
        min_steps, min_block = 8, 4 * 1024 * 1024
    else:
        # v5e / v6e: single TC; >=3 steps for input-prefetch / output-writeback overlap.
        min_steps, min_block = 3, 2 * 1024 * 1024
    return vmem_limit, block_budget, min_steps, min_block


# --------------------------------------------------------------------------------------
# Kernels
# --------------------------------------------------------------------------------------
def _scse_fused_kernel(x_ref, ws_ref, w1t_ref, b1_ref, w2_ref, b2_ref, bs_ref, o_ref):
    """Single-pass kernel. Block = (Bblk, C, HW): pool + both gates + max-fusion."""
    bs = bs_ref[0]                      # scalar spatial-conv bias (SMEM)
    ws = ws_ref[...]                    # (C, 1)  -- hoisted out of the per-image unroll
    w1t = w1t_ref[...]                  # (C, Cr) -- already scaled by 1/HW (pool fold)
    b1 = b1_ref[...]                    # (1, Cr)
    w2 = w2_ref[...]                    # (C, Cr)
    b2 = b2_ref[...]                    # (C, 1)
    out_dtype = o_ref.dtype

    for b in range(x_ref.shape[0]):     # static unroll, capped at 4 images per step
        x = x_ref[b].astype(jnp.float32)                                   # (C, HW)

        # -- spatial SE: per-pixel channel reduction on VPU/XLU (no M=1 MXU matmul) --
        s = jax.nn.sigmoid(jnp.sum(x * ws, axis=0, keepdims=True) + bs)    # (1, HW)

        # -- channel SE: global avg-pool (1/HW folded into w1t) + tiny FCs on VPU/XLU --
        pooled = jnp.sum(x, axis=1, keepdims=True)                         # (C, 1)
        h = jnp.maximum(jnp.sum(pooled * w1t, axis=0, keepdims=True) + b1, 0.0)  # (1, Cr)
        z = jax.nn.sigmoid(jnp.sum(h * w2, axis=1, keepdims=True) + b2)    # (C, 1)

        # -- fusion: 'max' (NOTE: fold/zero-tail invariants only hold for this form) --
        o_ref[b] = jnp.maximum(x * s, x * z).astype(out_dtype)


def _scse_tile_kernel(x_ref, ws_ref, z_ref, bs_ref, o_ref):
    """Large-feature-map path: channel gate z precomputed; elementwise over HW tiles.

    Safe with a padded (masked) tail HW tile: the only cross-dim reduction is over the
    full C axis, so unspecified values in padded lanes never leak into valid lanes and
    their outputs are dropped by the masked writeback.
    """
    x = x_ref[...].astype(jnp.float32)                                     # (C, HWt)
    s = jax.nn.sigmoid(jnp.sum(x * ws_ref[...], axis=0, keepdims=True) + bs_ref[0])
    o_ref[...] = jnp.maximum(x * s, x * z_ref[...]).astype(o_ref.dtype)


# --------------------------------------------------------------------------------------
# Block-size selection helpers
# --------------------------------------------------------------------------------------
def _choose_bblk(B, per_image_bytes, block_budget, min_block_bytes, min_steps):
    """Images per grid step: smallest divisor of B (<=4) whose x-block clears the
    per-step size floor, never dropping below min_steps when a smaller divisor exists,
    and never exceeding the per-step VMEM block budget."""
    divs = [d for d in range(1, min(B, 4) + 1) if B % d == 0]
    fit = [d for d in divs if d * per_image_bytes <= block_budget] or [1]
    choice = fit[0]
    for d in fit:
        if B // d < min_steps and d != fit[0]:
            break
        choice = d
        if d * per_image_bytes >= min_block_bytes:
            break
    return choice


def _choose_hwt(C, HW, block_budget):
    """Largest lane-dense (multiple-of-128) HW tile whose f32-equivalent x block fits
    the budget.  Falls back to the full HW extent for tiny feature maps."""
    per_lane_bytes = C * 4
    hwt = (block_budget // max(per_lane_bytes, 1)) // 128 * 128
    hwt = max(128, min(hwt, 65536))
    if hwt >= HW:
        return HW          # full extent: (8,128) rule satisfied by "equals full dim"
    return hwt


# --------------------------------------------------------------------------------------
# Wrapper
# --------------------------------------------------------------------------------------
def scse_forward(x_nchw, params, *, block_bytes_budget=None):
    """SCSELayer(spatial=True, channel=True, fusion='max') forward.

    x_nchw: (B, C, H, W), float32 or bfloat16 (I/O dtype is passed through; math is f32).
    params: ws (1,C), bs (1,1), w1 (Cr,C), b1 (Cr,1), w2 (C,Cr), b2 (C,1).
    """
    B, C, H, W = x_nchw.shape
    HW = H * W
    Cr = params["w1"].shape[0]
    io_dtype = x_nchw.dtype

    vmem_limit, auto_budget, min_steps, min_block = _budgets()
    budget = auto_budget if block_bytes_budget is None else block_bytes_budget

    # No padding / dtype copy of x in HBM: the kernel block covers the full (C, HW)
    # extent, so non-128-multiple HW only costs a masked tail store per row.
    x3 = x_nchw.reshape(B, C, HW)

    ws_col = params["ws"].astype(jnp.float32).reshape(C, 1)
    bs = params["bs"].astype(jnp.float32).reshape(1)          # SMEM scalar
    w1 = params["w1"].astype(jnp.float32)
    b1_row = params["b1"].astype(jnp.float32).reshape(1, Cr)
    w2_m = params["w2"].astype(jnp.float32).reshape(C, Cr)
    b2_col = params["b2"].astype(jnp.float32).reshape(C, 1)

    per_image_bytes = C * HW * 4        # f32-equivalent (conservative for bf16 I/O)

    if per_image_bytes <= budget:
        # ---------------- Path A: fused single-pass, multiple images per grid step ----
        bblk = _choose_bblk(B, per_image_bytes, budget, min_block, min_steps)
        grid = (B // bblk,)

        w1t_s = (w1.T / float(HW)).reshape(C, Cr)              # fold 1/HW of the avg-pool

        out = pl.pallas_call(
            _scse_fused_kernel,
            out_shape=jax.ShapeDtypeStruct((B, C, HW), io_dtype),
            grid=grid,
            in_specs=[
                pl.BlockSpec((bblk, C, HW), lambda g: (g, 0, 0)),           # x
                pl.BlockSpec((C, 1), lambda g: (0, 0)),                     # ws
                pl.BlockSpec((C, Cr), lambda g: (0, 0)),                    # w1^T / HW
                pl.BlockSpec((1, Cr), lambda g: (0, 0)),                    # b1
                pl.BlockSpec((C, Cr), lambda g: (0, 0)),                    # w2
                pl.BlockSpec((C, 1), lambda g: (0, 0)),                     # b2
                pl.BlockSpec(memory_space=pltpu.MemorySpace.SMEM),          # bs scalar
            ],
            out_specs=pl.BlockSpec((bblk, C, HW), lambda g: (g, 0, 0)),
            compiler_params=pltpu.CompilerParams(
                dimension_semantics=("parallel",),
                vmem_limit_bytes=vmem_limit),
        )(x3, ws_col, w1t_s, b1_row, w2_m, b2_col, bs)
    else:
        # ---------------- Path B: big feature maps — precompute z, tile HW ------------
        # Tiny pre-pass (pure JAX): global avg pool -> fc1 -> relu -> fc2 -> sigmoid.
        pooled = jnp.mean(x3, axis=2, dtype=jnp.float32)                    # (B, C)
        h = jnp.maximum(pooled @ w1.T + b1_row, 0.0)                        # (B, Cr)
        z = jax.nn.sigmoid(h @ w2_m.T + b2_col.reshape(1, C))               # (B, C)
        z = z.reshape(B, C, 1).astype(jnp.float32)

        hwt = _choose_hwt(C, HW, budget)
        num_t = pl.cdiv(HW, hwt)
        grid = (B, num_t)               # tile axis innermost: ws/z fetched once per image

        out = pl.pallas_call(
            _scse_tile_kernel,
            out_shape=jax.ShapeDtypeStruct((B, C, HW), io_dtype),
            grid=grid,
            in_specs=[
                pl.BlockSpec((None, C, hwt), lambda b, t: (b, 0, t)),       # x (batch squeezed)
                pl.BlockSpec((C, 1), lambda b, t: (0, 0)),                  # ws
                pl.BlockSpec((None, C, 1), lambda b, t: (b, 0, 0)),         # z gate
                pl.BlockSpec(memory_space=pltpu.MemorySpace.SMEM),          # bs scalar
            ],
            out_specs=pl.BlockSpec((None, C, hwt), lambda b, t: (b, 0, t)),
            compiler_params=pltpu.CompilerParams(
                dimension_semantics=("parallel", "parallel"),
                vmem_limit_bytes=vmem_limit),
        )(x3, ws_col, z, bs)

    return out.reshape(B, C, H, W)


# --------------------------------------------------------------------------------------
# Pure-JAX reference (matches the PyTorch SCSELayer forward, fusion='max')
# --------------------------------------------------------------------------------------
def scse_reference(x_nchw, params):
    B, C, H, W = x_nchw.shape
    x = x_nchw.reshape(B, C, H * W).astype(jnp.float32)

    # spatial SE
    s = jnp.einsum("oc,bcs->bos", params["ws"], x) + params["bs"][None]     # (B,1,HW)
    s = jax.nn.sigmoid(s)
    s_out = x * s

    # channel SE
    pooled = jnp.mean(x, axis=2, keepdims=True)                             # (B,C,1)
    h = jnp.einsum("rc,bcs->brs", params["w1"], pooled) + params["b1"][None]
    h = jnp.maximum(h, 0.0)
    z = jnp.einsum("cr,brs->bcs", params["w2"], h) + params["b2"][None]
    z = jax.nn.sigmoid(z)
    c_out = x * z

    return jnp.maximum(s_out, c_out).reshape(B, C, H, W)


if __name__ == "__main__":
    # num_channels must satisfy num_channels // 16 >= 1 (reduction=16 in ChannelSELayer)
    B, C, H, W = 2, 32, 8, 8
    Cr = C // 16

    key = jax.random.PRNGKey(0)
    k_x, k_x2, k_ws, k_bs, k_w1, k_b1, k_w2, k_b2 = jax.random.split(key, 8)

    x = jax.random.normal(k_x, (B, C, H, W), dtype=jnp.float32)
    params = {
        "ws": jax.random.normal(k_ws, (1, C), dtype=jnp.float32) * 0.1,
        "bs": jax.random.normal(k_bs, (1, 1), dtype=jnp.float32) * 0.1,
        "w1": jax.random.normal(k_w1, (Cr, C), dtype=jnp.float32) * 0.1,
        "b1": jax.random.normal(k_b1, (Cr, 1), dtype=jnp.float32) * 0.1,
        "w2": jax.random.normal(k_w2, (C, Cr), dtype=jnp.float32) * 0.1,
        "b2": jax.random.normal(k_b2, (C, 1), dtype=jnp.float32) * 0.1,
    }

    ref = scse_reference(x, params)

    # Fused single-pass path (HW=64 is NOT a multiple of 128: exercises the no-pad path).
    out_fused = jax.block_until_ready(scse_forward(x, params))
    assert out_fused.shape == (B, C, H, W)
    assert jnp.allclose(out_fused, ref, atol=1e-5, rtol=1e-5), "fused path mismatch vs reference"

    # Large-feature-map tiled path (forced here by shrinking the block budget).
    out_tiled = jax.block_until_ready(scse_forward(x, params, block_bytes_budget=0))
    assert jnp.allclose(out_tiled, ref, atol=1e-5, rtol=1e-5), "tiled path mismatch vs reference"

    # bf16 I/O pass-through (math stays f32 in-kernel); lane-aligned shape for packing.
    x2 = jax.random.normal(k_x2, (B, C, 16, 8), dtype=jnp.float32)
    x2_bf16 = x2.astype(jnp.bfloat16)
    ref_bf16 = scse_reference(x2_bf16.astype(jnp.float32), params)
    out_bf16 = jax.block_until_ready(scse_forward(x2_bf16, params))
    assert out_bf16.dtype == jnp.bfloat16
    assert jnp.allclose(out_bf16.astype(jnp.float32), ref_bf16, atol=5e-2, rtol=5e-2), \
        "bf16 I/O path mismatch vs reference"

    print("KERNEL_OK")
</pallas_src>

<mosaic_0001>
module attributes {stable_mosaic.version = 11 : i64} {
  func.func @_scse_fused_kernel(%arg0: i32, %arg1: memref<1x32x64xf32, #tpu.memory_space<vmem>>, %arg2: memref<32x1xf32, #tpu.memory_space<vmem>>, %arg3: memref<32x2xf32, #tpu.memory_space<vmem>>, %arg4: memref<1x2xf32, #tpu.memory_space<vmem>>, %arg5: memref<32x2xf32, #tpu.memory_space<vmem>>, %arg6: memref<32x1xf32, #tpu.memory_space<vmem>>, %arg7: memref<1xf32, #tpu.memory_space<smem>>, %arg8: memref<1x32x64xf32, #tpu.memory_space<vmem>>) attributes {dimension_semantics = [#tpu.dimension_semantics<parallel>], iteration_bounds = array<i64: 2>, scalar_prefetch = 0 : i64, scratch_operands = 0 : i64, tpu.core_type = #tpu.core_type<tc>, window_params = [{transform_indices = @transform_0, window_bounds = array<i64: 1, 32, 64>}, {pipeline_mode = #tpu.pipeline_mode<synchronous>, transform_indices = @transform_1, window_bounds = array<i64: 32, 1>}, {pipeline_mode = #tpu.pipeline_mode<synchronous>, transform_indices = @transform_2, window_bounds = array<i64: 32, 2>}, {pipeline_mode = #tpu.pipeline_mode<synchronous>, transform_indices = @transform_3, window_bounds = array<i64: 1, 2>}, {pipeline_mode = #tpu.pipeline_mode<synchronous>, transform_indices = @transform_4, window_bounds = array<i64: 32, 2>}, {pipeline_mode = #tpu.pipeline_mode<synchronous>, transform_indices = @transform_5, window_bounds = array<i64: 32, 1>}, {transform_indices = @transform_6, window_bounds = array<i64: 1>}, {transform_indices = @transform_7, window_bounds = array<i64: 1, 32, 64>}]} {
    %c0 = arith.constant 0 : index
    %0 = memref.load %arg7[%c0] : memref<1xf32, #tpu.memory_space<smem>>
    %c0_0 = arith.constant 0 : index
    %c0_1 = arith.constant 0 : index
    %1 = vector.load %arg2[%c0_0, %c0_1] : memref<32x1xf32, #tpu.memory_space<vmem>>, vector<32x1xf32>
    %c0_2 = arith.constant 0 : index
    %c0_3 = arith.constant 0 : index
    %2 = vector.load %arg3[%c0_2, %c0_3] : memref<32x2xf32, #tpu.memory_space<vmem>>, vector<32x2xf32>
    %c0_4 = arith.constant 0 : index
    %c0_5 = arith.constant 0 : index
    %3 = vector.load %arg4[%c0_4, %c0_5] : memref<1x2xf32, #tpu.memory_space<vmem>>, vector<1x2xf32>
    %c0_6 = arith.constant 0 : index
    %c0_7 = arith.constant 0 : index
    %4 = vector.load %arg5[%c0_6, %c0_7] : memref<32x2xf32, #tpu.memory_space<vmem>>, vector<32x2xf32>
    %c0_8 = arith.constant 0 : index
    %c0_9 = arith.constant 0 : index
    %5 = vector.load %arg6[%c0_8, %c0_9] : memref<32x1xf32, #tpu.memory_space<vmem>>, vector<32x1xf32>
    %c0_10 = arith.constant 0 : index
    %c0_11 = arith.constant 0 : index
    %c0_12 = arith.constant 0 : index
    %6 = vector.load %arg1[%c0_10, %c0_11, %c0_12] : memref<1x32x64xf32, #tpu.memory_space<vmem>>, vector<1x32x64xf32>
    %7 = vector.shape_cast %6 : vector<1x32x64xf32> to vector<32x64xf32>
    %8 = vector.broadcast %1 : vector<32x1xf32> to vector<32x64xf32>
    %9 = arith.mulf %7, %8 : vector<32x64xf32>
    %cst = arith.constant dense<0.000000e+00> : vector<64xf32>
    %10 = vector.multi_reduction <add>, %9, %cst [0] : vector<32x64xf32> to vector<64xf32>
    %11 = vector.shape_cast %10 : vector<64xf32> to vector<1x64xf32>
    %12 = vector.broadcast %0 : f32 to vector<1x64xf32>
    %13 = arith.addf %11, %12 : vector<1x64xf32>
    %14 = arith.negf %13 : vector<1x64xf32>
    %15 = math.exp %14 : vector<1x64xf32>
    %cst_13 = arith.constant 1.000000e+00 : f32
    %16 = vector.broadcast %cst_13 : f32 to vector<1x64xf32>
    %17 = arith.addf %16, %15 : vector<1x64xf32>
    %18 = arith.divf %16, %17 : vector<1x64xf32>
    %cst_14 = arith.constant dense<0.000000e+00> : vector<32xf32>
    %19 = vector.multi_reduction <add>, %7, %cst_14 [1] : vector<32x64xf32> to vector<32xf32>
    %20 = vector.shape_cast %19 : vector<32xf32> to vector<32x1xf32>
    %21 = vector.broadcast %20 : vector<32x1xf32> to vector<32x2xf32>
    %22 = arith.mulf %21, %2 : vector<32x2xf32>
    %cst_15 = arith.constant dense<0.000000e+00> : vector<2xf32>
    %23 = vector.multi_reduction <add>, %22, %cst_15 [0] : vector<32x2xf32> to vector<2xf32>
    %24 = vector.shape_cast %23 : vector<2xf32> to vector<1x2xf32>
    %25 = arith.addf %24, %3 : vector<1x2xf32>
    %cst_16 = arith.constant 0.000000e+00 : f32
    %26 = vector.broadcast %cst_16 : f32 to vector<1x2xf32>
    %27 = arith.maximumf %25, %26 : vector<1x2xf32>
    %28 = vector.broadcast %27 : vector<1x2xf32> to vector<32x2xf32>
    %29 = arith.mulf %28, %4 : vector<32x2xf32>
    %cst_17 = arith.constant dense<0.000000e+00> : vector<32xf32>
    %30 = vector.multi_reduction <add>, %29, %cst_17 [1] : vector<32x2xf32> to vector<32xf32>
    %31 = vector.shape_cast %30 : vector<32xf32> to vector<32x1xf32>
    %32 = arith.addf %31, %5 : vector<32x1xf32>
    %33 = arith.negf %32 : vector<32x1xf32>
    %34 = math.exp %33 : vector<32x1xf32>
    %cst_18 = arith.constant 1.000000e+00 : f32
    %35 = vector.broadcast %cst_18 : f32 to vector<32x1xf32>
    %36 = arith.addf %35, %34 : vector<32x1xf32>
    %37 = arith.divf %35, %36 : vector<32x1xf32>
    %38 = vector.broadcast %18 : vector<1x64xf32> to vector<32x64xf32>
    %39 = arith.mulf %7, %38 : vector<32x64xf32>
    %40 = vector.broadcast %37 : vector<32x1xf32> to vector<32x64xf32>
    %41 = arith.mulf %7, %40 : vector<32x64xf32>
    %42 = arith.maximumf %39, %41 : vector<32x64xf32>
    %c0_19 = arith.constant 0 : index
    %c0_20 = arith.constant 0 : index
    %c0_21 = arith.constant 0 : index
    %43 = vector.load %arg8[%c0_19, %c0_20, %c0_21] : memref<1x32x64xf32, #tpu.memory_space<vmem>>, vector<1x32x64xf32>
    %44 = vector.shape_cast %43 : vector<1x32x64xf32> to vector<32x64xf32>
    %45 = vector.shape_cast %42 : vector<32x64xf32> to vector<1x32x64xf32>
    tpu.vector_store %arg8[%c0_19, %c0_20, %c0_21], %45 {strides = array<i32>} : memref<1x32x64xf32, #tpu.memory_space<vmem>>, vector<1x32x64xf32>,
    return
  }
  func.func @transform_0(%arg0: i32) -> (i32, i32, i32) {
    %c0_i32 = arith.constant 0 : i32
    %c0_i32_0 = arith.constant 0 : i32
    %c0_i32_1 = arith.constant 0 : i32
    return %arg0, %c0_i32, %c0_i32_0 : i32, i32, i32
  }
  func.func @transform_1(%arg0: i32) -> (i32, i32) {
    %c0_i32 = arith.constant 0 : i32
    %c0_i32_0 = arith.constant 0 : i32
    %c0_i32_1 = arith.constant 0 : i32
    return %c0_i32, %c0_i32_0 : i32, i32
  }
  func.func @transform_2(%arg0: i32) -> (i32, i32) {
    %c0_i32 = arith.constant 0 : i32
    %c0_i32_0 = arith.constant 0 : i32
    %c0_i32_1 = arith.constant 0 : i32
    return %c0_i32, %c0_i32_0 : i32, i32
  }
  func.func @transform_3(%arg0: i32) -> (i32, i32) {
    %c0_i32 = arith.constant 0 : i32
    %c0_i32_0 = arith.constant 0 : i32
    %c0_i32_1 = arith.constant 0 : i32
    return %c0_i32, %c0_i32_0 : i32, i32
  }
  func.func @transform_4(%arg0: i32) -> (i32, i32) {
    %c0_i32 = arith.constant 0 : i32
    %c0_i32_0 = arith.constant 0 : i32
    %c0_i32_1 = arith.constant 0 : i32
    return %c0_i32, %c0_i32_0 : i32, i32
  }
  func.func @transform_5(%arg0: i32) -> (i32, i32) {
    %c0_i32 = arith.constant 0 : i32
    %c0_i32_0 = arith.constant 0 : i32
    %c0_i32_1 = arith.constant 0 : i32
    return %c0_i32, %c0_i32_0 : i32, i32
  }
  func.func @transform_6(%arg0: i32) -> i32 {
    %c0_i32 = arith.constant 0 : i32
    %c0_i32_0 = arith.constant 0 : i32
    return %c0_i32 : i32
  }
  func.func @transform_7(%arg0: i32) -> (i32, i32, i32) {
    %c0_i32 = arith.constant 0 : i32
    %c0_i32_0 = arith.constant 0 : i32
    %c0_i32_1 = arith.constant 0 : i32
    return %arg0, %c0_i32, %c0_i32_0 : i32, i32, i32
  }
}

</mosaic_0001>

<bundles_post_ra>
// kernel: tpu_custom_call.1
= control target key start
LH: loop header
LB: loop body
LE: loop exit
PB: predicated region body
PF: predicated region fallthrough
CT: control target
= control target key end

     0   :  { %s1000_s0 = inlined_call_operand.vmem [shape: f32[2,32,64], index: 0, kind: input, shape index: {}]   ;;  %s1001_s1 = inlined_call_operand.vmem [shape: f32[32,1], index: 1, kind: input, shape index: {}]   ;;  %s1002_s2 = inlined_call_operand.vmem [shape: f32[32,2], index: 2, kind: input, shape index: {}]   ;;  %s1003_s3 = inlined_call_operand.vmem [shape: f32[1,2], index: 3, kind: input, shape index: {}]   ;;  %s1004_s4 = inlined_call_operand.vmem [shape: f32[32,2], index: 4, kind: input, shape index: {}]   ;;  %s1005_s5 = inlined_call_operand.vmem [shape: f32[32,1], index: 5, kind: input, shape index: {}]   ;;  %s1006_s6 = inlined_call_operand.<no memory space> [shape: f32[1], index: 6, kind: input, shape index: {}]   ;;  %s1007_s7 = inlined_call_operand.hbm [shape: f32[2,32,64], index: 7, kind: output, shape index: {}]  }
   0x1   :  { %12 = sst [smem:[#allocation2]] %s1006_s6 }
   0x2   :  { %13 = vsyncpa [#allocation4], 0 }
   0x3   :  { %15 = vsyncpa [#allocation4 + $0x1], 0  ;;  %s796_s26 = smov 0   ;;  %s798_s27 = smov 0  }
   0x4   :  { %s800_s28 = smov 0   ;;  %s802_s29 = smov 0  }
   0x5 LB: > { %s817_s6 = sadd.s32 4294967295, %s748_s29   ;;  %s602_s30 = sadd.s32 4294967294, %s748_s29   ;;  %s748_s29 = sphi %s802_s29, %s1015_s29   ;;  %s744_s28 = sphi %s800_s28, %s1014_s28   ;;  %s740_s27 = sphi %s798_s27, %s1013_s27   ;;  %s736_s26 = sphi %s796_s26, %s1012_s26  }
   0x6   : > { %s821_s8 = sadd.s32 1, %s748_s29   ;;  %s180_s9 = sadd.s32 1, %s744_s28 }
   0x7   : > { %s177_s10 = ssub.s32 %s748_s29, %s821_s8  ;;  %p190_p0 = scmp.ne.s32.totalorder %s744_s28, %s740_s27 }
   0x8   : > { %p178_p1 = scmp.eq.s32.totalorder %s177_s10, 0  ;;  %p191_p2 = scmp.eq.s32.totalorder %s817_s6, 1 }
   0x9   : > { %p196_p3 = scmp.ne.s32.totalorder %s740_s27, %s736_s26  ;;  %p197_p4 = scmp.eq.s32.totalorder %s602_s30, 1 }
   0xa   : > { %s832_s11 = scalar_select %p178_p1, %s744_s28, %s180_s9  }
   0xb   : > { %p834_p5 = por %p191_p2, %p190_p0  ;;  %p838_p6 = por %p197_p4, %p196_p3 }
   0xc   : > { %p605_p7 = scmp.ge.s32.totalorder %s748_s29, 1  ;;  %p241_p8 = scmp.lt.s32.totalorder %s748_s29, 3 }
   0xe   : > { %p242_p9 = pnand %p605_p7, %p241_p8 }
   0xf   : > { %p273_p10 = scmp.lt.s32.totalorder (!%p242_p9), %s817_s6, 1  ;;  %s278_s23 = sld [smem:[#allocation2]] (!%p242_p9) }
  0x10   : > { %245 = sbr.rel (%p242_p9) target bundleno = 469 (0x1d5), region = 48  ;;  %s270_s24 = sand.u32 (!%p242_p9), 1, %s740_s27  }
  0x11   : > { %s606_s25 = sshll.u32 (!%p242_p9), %s270_s24, 5  ;;  %s620_s9 = sshll.u32 (!%p242_p9), %s817_s6, 5 }
  0x12   : > { %s272_s30 = scalar_lea.vmem (!%p242_p9), [#allocation3], %s606_s25  ;;  %s536_s15 = scalar_lea.hbm (!%p242_p9), %s1007_s7, %s620_s9 }
  0x13   : > { %s706_s22 = scalar_lea.hbm (!%p242_p9), %s1007_s7, 64 }
  0x15   : > { %v279_v0 = vld [vmem:[%s1001_s1] sm:$0xff]  ;;  %v750_v1 = vmov 0   ;;  %s274_s16 = scalar_select %p273_p10, %s817_s6, 1  ;;  %vm324_vm0 = vcmask 523264   ;;  %v285_v13 = vld [vmem:[%s1002_s2 + $0x10] sm:$0xff]  ;;  %v284_v14 = vld [vmem:[%s1002_s2 + $0x8] sm:$0xff] }
  0x16   : > { %663 = vset.pattern.permute.xlu2 %v750_v1  ;;  %664 = vset.pattern.permute.xlu0 %v750_v1  ;;  %v283_v12 = vld [vmem:[%s1002_s2] sm:$0xff]  ;;  %v286_v15 = vld [vmem:[%s1002_s2 + $0x18] sm:$0xff]  ;;  %vm375_vm1 = vcmask 15360   ;;  %v290_v39 = vld [vmem:[%s1004_s4 + $0x10] sm:$0xff]  ;;  %s525_s6 = scalar_lea.sflag [#allocation4], %s270_s24 }
  0x17   : > { %302 = vperm.xlu2 %663, %v279_v0   ;;  %665 = vset.pattern.permute.xlu1 %v750_v1  ;;  %s619_s17 = sshll.u32 %s274_s16, 5  ;;  %v287_v34 = vld [vmem:[%s1003_s3] sm:$0x1]  ;;  %v291_v38 = vld [vmem:[%s1004_s4 + $0x18] sm:$0xff]  ;;  %v289_v48 = vld [vmem:[%s1004_s4 + $0x8] sm:$0xff]  ;;  %s537_s16 = sshll.u32 %s272_s30, 4  ;;  %s538_s16 = int_to_ptr.vmem [resolvable:$true] %s537_s16 }
  0x18   : > { %s277_s20 = scalar_lea.vmem %s1000_s0, %s619_s17  ;;  %v288_v40 = vld [vmem:[%s1004_s4] sm:$0xff]  ;;  %v280_v51 = vld [vmem:[%s1001_s1 + $0x8] sm:$0xff]  ;;  %v281_v52 = vld [vmem:[%s1001_s1 + $0x10] sm:$0xff]  ;;  %s539_s17 = sshll.u32 %s536_s15, 4  ;;  %s540_s17 = int_to_ptr.hbm [resolvable:$true] %s539_s17 }
  0x19   : > { %v852_v2 = vld [vmem:[%s277_s20] sm:$0xff]  ;;  %v854_v3 = vld [vmem:[%s277_s20 + $0x10] sm:$0xff]  ;;  %v860_v6 = vld [vmem:[%s277_s20 + $0x8] sm:$0xff]  ;;  %s700_s18 = sshra.s32 %s540_s17, 4  ;;  %s701_s18 = int_to_ptr.hbm [resolvable:$true] %s700_s18 }
  0x1a   : > { %v359_v4 = vsel %vm324_vm0, %v852_v2, 0.0  ;;  %v365_v5 = vsel %vm324_vm0, %v854_v3, 0.0  ;;  %v862_v7 = vld [vmem:[%s277_s20 + $0x18] sm:$0xff]  ;;  %v362_v8 = vsel %vm324_vm0, %v860_v6, 0.0  ;;  %v294_v56 = vld [vmem:[%s1005_s5 + $0x10] sm:$0xff]  ;;  %v292_v57 = vld [vmem:[%s1005_s5] sm:$0xff]  ;;  %p707_p0 = scmp.lt.s32.totalorder %s701_s18, %s1007_s7 }
  0x1b   : > { %360 = vadd.xlane.f32.xlu0 %v359_v4  ;;  %366 = vadd.xlane.f32.xlu1 %v365_v5  ;;  %v368_v9 = vsel %vm324_vm0, %v862_v7, 0.0  ;;  %v282_v53 = vld [vmem:[%s1001_s1 + $0x18] sm:$0xff]  ;;  %v293_v5 = vld [vmem:[%s1005_s5 + $0x8] sm:$0xff]  ;;  %s702_s19 = scalar_lea.hbm %s701_s18, 32 }
  0x1c   : > { %v295_v55 = vld [vmem:[%s1005_s5 + $0x18] sm:$0xff]  ;;  %p703_p11 = scmp.ne.s32.totalorder %s701_s18, %s702_s19  ;;  %p708_p1 = scmp.lt.s32.totalorder %s706_s22, %s702_s19 }
  0x1e   : > { %p704_p12 = pnand %p703_p11, %p834_p5  ;;  %p709_p2 = por %p708_p1, %p707_p0 }
  0x20   : > { %p705_p13 = pneg %p704_p12 }
  0x22   : > { %p710_p3 = pnand %p709_p2, %p705_p13 }
  0x23   : > { %363 = vadd.xlane.f32.xlu0 %v362_v8  ;;  %369 = vadd.xlane.f32.xlu1 %v368_v9 }
  0x71   : > { %v303_v54 = vpop.permute.xlu2 %302 }
  0x8e   : > { %v361_v10 = vpop.xlane.xlu0 %360  ;;  %v367_v11 = vpop.xlane.xlu1 %366 }
  0x8f   : > { %v371_v16 = vmul.f32 %v361_v10, %v283_v12  ;;  %v373_v19 = vmul.f32 %v367_v11, %v285_v13 }
  0x91   : > { %v376_v22 = vsel %vm375_vm1, %v371_v16, 0.0  ;;  %v379_v25 = vsel %vm375_vm1, %v373_v19, 0.0 }
  0x96   : > { %v364_v17 = vpop.xlane.xlu0 %363  ;;  %v370_v18 = vpop.xlane.xlu1 %369 }
  0x97   : > { %v372_v20 = vmul.f32 %v364_v17, %v284_v14  ;;  %v374_v21 = vmul.f32 %v370_v18, %v286_v15 }
  0x99   : > { %v377_v23 = vsel %vm375_vm1, %v372_v20, 0.0  ;;  %v381_v26 = vsel %vm375_vm1, %v374_v21, 0.0 }
  0x9a   : > { %v378_v24 = vadd.f32 %v377_v23, %v376_v22 }
  0x9c   : > { %v380_v27 = vadd.f32 %v379_v25, %v378_v24 }
  0x9e   : > { %v382_v28 = vadd.f32 %v381_v26, %v380_v27 }
  0xa0   : > { %v383_v29 = vrot.slane %v382_v28, 4 }
  0xa2   : > { %v384_v30 = vadd.f32 %v383_v29, %v382_v28 }
  0xa4   : > { %v385_v31 = vrot.slane %v384_v30, 2 }
  0xa6   : > { %v386_v32 = vadd.f32 %v385_v31, %v384_v30 }
  0xa8   : > { %v387_v33 = vrot.slane %v386_v32, 1 }
  0xaa   : > { %v388_v35 = vadd.f32 %v387_v33, %v386_v32 }
  0xac   : > { %v389_v36 = vadd.f32 %v388_v35, %v287_v34 }
  0xae   : > { %v390_v37 = vmax.f32 %v389_v36, 0.0 }
  0xb0   : > { %v391_v41 = vperm.slane %v390_v37, 0 }
  0xb2   : > { %v395_v42 = vmul.f32 %v391_v41, %v291_v38  ;;  %v394_v43 = vmul.f32 %v391_v41, %v290_v39  ;;  %v392_v44 = vmul.f32 %v391_v41, %v288_v40  ;;  %v393_v49 = vmul.f32 %v391_v41, %v289_v48 }
  0xb3   : > { %v320_v38 = vmul.f32 %v303_v54, %v852_v2 }
  0xb4   : > { %v405_v45 = vsel %vm375_vm1, %v395_v42, 0.0  ;;  %v402_v46 = vsel %vm375_vm1, %v394_v43, 0.0  ;;  %v396_v47 = vsel %vm375_vm1, %v392_v44, 0.0  ;;  %v399_v50 = vsel %vm375_vm1, %v393_v49, 0.0 }
  0xb5   : > { %406 = vadd.xlane.f32.xlu1 %v405_v45  ;;  %403 = vadd.xlane.f32.xlu0 %v402_v46  ;;  %v325_v48 = vsel %vm324_vm0, %v320_v38, 0.0 }
  0xb6   : > { %397 = vadd.xlane.f32.xlu2 %v396_v47 }
  0xbe   : > { %400 = vadd.xlane.f32.xlu2 %v399_v50 }
  0xc9   : > { %307 = vperm.xlu0 %664, %v280_v51  }
  0xce   : > { %312 = vperm.xlu1 %665, %v281_v52  }
  0xd6   : > { %317 = vperm.xlu2 %663, %v282_v53  }
 0x128   : > { %v407_v58 = vpop.xlane.xlu1 %406  ;;  %v404_v59 = vpop.xlane.xlu0 %403 }
 0x129   : > { %v411_v60 = vadd.f32 %v407_v58, %v295_v55  ;;  %v410_v61 = vadd.f32 %v404_v59, %v294_v56  ;;  %v398_v62 = vpop.xlane.xlu2 %397 }
 0x12a   : > { %v408_v63 = vadd.f32 %v398_v62, %v292_v57 }
 0x12b   : > { %v612_v0 = vmul.f32 -1.442695, %v410_v61  ;;  %v613_v4 = vmul.f32 -1.442695, %v411_v60 }
 0x12c   : > { %v610_v1 = vmul.f32 -1.442695, %v408_v63 }
 0x12d   : > { %666 = vpow2.f32 %v612_v0 }
 0x12e   : > { %668 = vpow2.f32 %v610_v1 }
 0x12f   : > { %670 = vpow2.f32 %v613_v4 }
 0x131   : > { %v401_v8 = vpop.xlane.xlu2 %400 }
 0x132   : > { %v409_v9 = vadd.f32 %v401_v8, %v293_v5 }
 0x133   : > { %v667_v10 = vpop.eup %666 }
 0x134   : > { %v669_v11 = vpop.eup %668  ;;  %v426_v12 = vadd.f32 1.0, %v667_v10  ;;  %v611_v13 = vmul.f32 -1.442695, %v409_v9 }
 0x135   : > { %v424_v14 = vadd.f32 1.0, %v669_v11  ;;  %v671_v15 = vpop.eup %670 }
 0x136   : > { %672 = vrcp.f32 %v426_v12  ;;  %v924_v16 = vadd.f32 1.0, %v671_v15  ;;  %v467_v43 = vand.u32 2147483647, %v426_v12  ;;  %v469_v44 = vand.u32 2147483648, %v426_v12 }
 0x137   : > { %674 = vrcp.f32 %v424_v14  ;;  %v439_v25 = vand.u32 2147483648, %v424_v14  ;;  %v437_v27 = vand.u32 2147483647, %v424_v14  ;;  %vm433_vm3 = vweird.f32 %v424_v14 }
 0x138   : > { %676 = vpow2.f32 %v611_v13  ;;  %vm463_vm7 = vweird.f32 %v426_v12  ;;  %vm468_vm10 = vcmp.eq.f32.partialorder %v467_v43, 8.507059e+37  ;;  %v470_v57 = vor.u32 1.1754944e-38, %v469_v44 }
 0x139   : > { %678 = vrcp.f32 %v924_v16  ;;  %v440_v33 = vor.u32 1.1754944e-38, %v439_v25  ;;  %vm438_vm5 = vcmp.eq.f32.partialorder %v437_v27, 8.507059e+37  ;;  %v318_v49 = vpop.permute.xlu2 %317  ;;  %v484_v9 = vand.u32 2147483648, %v924_v16 }
 0x13a   : > { %v323_v58 = vmul.f32 %v318_v49, %v862_v7  ;;  %vm478_vm15 = vweird.f32 %v924_v16  ;;  %v482_v10 = vand.u32 2147483647, %v924_v16 }
 0x13b   : > { %v308_v29 = vpop.permute.xlu0 %307  ;;  %v485_v13 = vor.u32 1.1754944e-38, %v484_v9 }
 0x13c   : > { %v673_v17 = vpop.eup %672  ;;  %v321_v34 = vmul.f32 %v308_v29, %v860_v6  ;;  %v330_v4 = vsel %vm324_vm0, %v323_v58, 0.0 }
 0x13d   : > { %v675_v18 = vpop.eup %674  ;;  %v459_v19 = vmul.f32 %v673_v17, %v426_v12  ;;  %vm464_vm6 = vweird.f32 %v673_v17 }
 0x13e   : > { %v677_v20 = vpop.eup %676  ;;  %v429_v21 = vmul.f32 %v675_v18, %v424_v14  ;;  %vm434_vm2 = vweird.f32 %v675_v18  ;;  %v326_v45 = vsel %vm324_vm0, %v321_v34, 0.0  ;;  %vm936_vm8 = vmor %vm463_vm7, %vm464_vm6 }
 0x13f   : > { %v425_v22 = vadd.f32 1.0, %v677_v20  ;;  %v460_v24 = vsub.f32 1.0, %v459_v19  ;;  %v927_v28 = vpop.eup %678  ;;  %vm435_vm4 = vmor %vm433_vm3, %vm434_vm2  ;;  %v327_v56 = vadd.f32 %v326_v45, %v325_v48  ;;  %vm483_vm2 = vcmp.eq.f32.partialorder %v482_v10, 8.507059e+37 }
 0x140   : > { %v430_v23 = vsub.f32 1.0, %v429_v21  ;;  %v313_v32 = vpop.permute.xlu1 %312  ;;  %v474_v36 = vmul.f32 %v927_v28, %v924_v16  ;;  %vm479_vm14 = vweird.f32 %v927_v28  ;;  %v338_v21 = vstv %s278_s23 }
 0x141   : > { %680 = vrcp.f32 %v425_v22  ;;  %v461_v31 = vmul.f32 %v673_v17, %v460_v24  ;;  %v322_v40 = vmul.f32 %v313_v32, %v854_v3  ;;  %v452_v51 = vand.u32 2147483647, %v425_v22  ;;  %vm480_vm1 = vmor %vm478_vm15, %vm479_vm14 }
 0x142   : > { %v431_v26 = vmul.f32 %v675_v18, %v430_v23  ;;  %v475_v47 = vsub.f32 1.0, %v474_v36  ;;  %v454_v52 = vand.u32 2147483648, %v425_v22  ;;  %vm448_vm11 = vweird.f32 %v425_v22 }
 0x143   : > { %v462_v41 = vadd.f32 %v673_v17, %v461_v31  ;;  %v328_v53 = vsel %vm324_vm0, %v322_v40, 0.0  ;;  %vm453_vm13 = vcmp.eq.f32.partialorder %v452_v51, 8.507059e+37 }
 0x144   : > { %v432_v30 = vadd.f32 %v675_v18, %v431_v26  ;;  %v476_v60 = vmul.f32 %v927_v28, %v475_v47  ;;  %v329_v61 = vadd.f32 %v328_v53, %v327_v56  ;;  %v455_v63 = vor.u32 1.1754944e-38, %v454_v52 }
 0x145   : > { %v466_v54 = vsel %vm936_vm8, %v673_v17, %v462_v41 }
 0x146   : > { %v436_v35 = vsel %vm435_vm4, %v675_v18, %v432_v30  ;;  %v471_v62 = vsel %vm468_vm10, %v470_v57, %v466_v54  ;;  %v477_v5 = vadd.f32 %v927_v28, %v476_v60  ;;  %v331_v8 = vadd.f32 %v330_v4, %v329_v61 }
 0x147   : > { %v681_v37 = vpop.eup %680  ;;  %v441_v39 = vsel %vm438_vm5, %v440_v33, %v436_v35 }
 0x148   : > { %494 = vperm.xlu2 %663, %v441_v39   ;;  %v444_v42 = vmul.f32 %v681_v37, %v425_v22  ;;  %vm449_vm9 = vweird.f32 %v681_v37  ;;  %v481_v11 = vsel %vm480_vm1, %v927_v28, %v477_v5  ;;  %v332_v12 = vrot.slane %v331_v8, 4 }
 0x149   : > { %vm450_vm12 = vmor %vm448_vm11, %vm449_vm9  ;;  %v486_v14 = vsel %vm483_vm2, %v485_v13, %v481_v11 }
 0x14a   : > { %v445_v46 = vsub.f32 1.0, %v444_v42  ;;  %v333_v15 = vadd.f32 %v332_v12, %v331_v8 }
 0x14c   : > { %v446_v55 = vmul.f32 %v681_v37, %v445_v46  ;;  %v334_v17 = vrot.slane %v333_v15, 2 }
 0x14e   : > { %v447_v59 = vadd.f32 %v681_v37, %v446_v55  ;;  %v335_v18 = vadd.f32 %v334_v17, %v333_v15 }
 0x150   : > { %504 = vperm.xlu2 %663, %v471_v62   ;;  %v451_v0 = vsel %vm450_vm12, %v681_v37, %v447_v59  ;;  %v336_v19 = vrot.slane %v335_v18, 1 }
 0x151   : > { %v456_v1 = vsel %vm453_vm13, %v455_v63, %v451_v0 }
 0x152   : > { %499 = vperm.xlu1 %665, %v456_v1   ;;  %v337_v20 = vadd.f32 %v336_v19, %v335_v18 }
 0x154   : > { %v339_v22 = vadd.f32 %v338_v21, %v337_v20 }
 0x156   : > { %v609_v23 = vmul.f32 -1.442695, %v339_v22 }
 0x158   : > { %682 = vpow2.f32 %v609_v23 }
 0x15a   : > { %509 = vperm.xlu1 %665, %v486_v14  }
 0x15e   : > { %v683_v16 = vpop.eup %682 }
 0x15f   : > { %v343_v24 = vadd.f32 1.0, %v683_v16 }
 0x161   : > { %684 = vrcp.f32 %v343_v24  ;;  %v355_v30 = vand.u32 2147483648, %v343_v24  ;;  %vm349_vm4 = vweird.f32 %v343_v24  ;;  %v353_v31 = vand.u32 2147483647, %v343_v24 }
 0x163   : > { %v356_v33 = vor.u32 1.1754944e-38, %v355_v30  ;;  %vm354_vm6 = vcmp.eq.f32.partialorder %v353_v31, 8.507059e+37 }
 0x167   : > { %v685_v25 = vpop.eup %684 }
 0x168   : > { %v345_v26 = vmul.f32 %v685_v25, %v343_v24  ;;  %vm350_vm3 = vweird.f32 %v685_v25 }
 0x169   : > { %vm351_vm5 = vmor %vm349_vm4, %vm350_vm3 }
 0x16a   : > { %v346_v27 = vsub.f32 1.0, %v345_v26 }
 0x16c   : > { %v347_v28 = vmul.f32 %v685_v25, %v346_v27 }
 0x16e   : > { %v348_v29 = vadd.f32 %v685_v25, %v347_v28 }
 0x170   : > { %v352_v32 = vsel %vm351_vm5, %v685_v25, %v348_v29 }
 0x171   : > { %v357_v34 = vsel %vm354_vm6, %v356_v33, %v352_v32 }
 0x172   : > { %v488_v36 = vmul.f32 %v357_v34, %v852_v2  ;;  %v490_v40 = vmul.f32 %v357_v34, %v854_v3  ;;  %v489_v44 = vmul.f32 %v357_v34, %v860_v6  ;;  %v491_v46 = vmul.f32 %v357_v34, %v862_v7 }
 0x1a2   : > { %v495_v35 = vpop.permute.xlu2 %494 }
 0x1a3   : > { %v512_v37 = vmul.f32 %v495_v35, %v852_v2 }
 0x1a5   : > { %v516_v38 = vmax.f32 %v488_v36, %v512_v37 }
 0x1a7   : > { %520 = vst.msk [vmem:[%s272_s30] sm:$0xff] %vm324_vm0, %v516_v38 }
 0x1aa   : > { %v505_v39 = vpop.permute.xlu2 %504 }
 0x1ab   : > { %v514_v41 = vmul.f32 %v505_v39, %v854_v3 }
 0x1ad   : > { %v518_v42 = vmax.f32 %v490_v40, %v514_v41 }
 0x1af   : > { %522 = vst.msk [vmem:[%s272_s30 + $0x10] sm:$0xff] %vm324_vm0, %v518_v42 }
 0x1c4   : > { %v500_v43 = vpop.permute.xlu1 %499 }
 0x1c5   : > { %v513_v45 = vmul.f32 %v500_v43, %v860_v6 }
 0x1c7   : > { %v517_v2 = vmax.f32 %v489_v44, %v513_v45 }
 0x1c9   : > { %521 = vst.msk [vmem:[%s272_s30 + $0x8] sm:$0xff] %vm324_vm0, %v517_v2 }
 0x1cc   : > { %v510_v3 = vpop.permute.xlu1 %509 }
 0x1cd   : > { %v515_v47 = vmul.f32 %v510_v3, %v862_v7 }
 0x1cf   : > { %v519_v48 = vmax.f32 %v491_v46, %v515_v47 }
 0x1d1   : > { %523 = vst.msk [vmem:[%s272_s30 + $0x18] sm:$0xff] %vm324_vm0, %v519_v48 }
 0x1d2   : > { %713 = shalt.err (!%p710_p3)
}
 0x1d3   : > { %s751_s24 = smov 128   ;;  %s752_s30 = smov 8  }
 0x1d4   : > { %621 = dma.vmem_to_hbm [thread:$0]  (%p834_p5), %s538_s16, 512, %s540_s17, %s525_s6, %s751_s24, %s751_s24, %s752_s30  }
 0x1d5 PF: > { %p627_p4 = scmp.ge.s32.totalorder %s748_s29, 2  ;;  %s554_s9 = sand.u32 1, %s736_s26  }
 0x1d6   : > { %s555_s10 = scalar_lea.sflag [#allocation4], %s554_s9 }
 0x1d7   : > { %p624_p7 = pnand %p627_p4, %p838_p6 }
 0x1d9   : > { %p625_p8 = pneg %p624_p7 }
 0x1db   : > { %731 = dma.done.wait (%p625_p8), %s555_s10, 512  }
 0x1dc   : > { %733 = vsyncadd (%p625_p8), %s555_s10, 4294966784  ;;  %p18_p9 = scmp.ge.s32.totalorder %s821_s8, 4   ;;  %s1012_s26 = smov %s740_s27 }
 0x1dd   : > { %s1013_s27 = smov %s744_s28  ;;  %s1014_s28 = smov %s832_s11 }
 0x1de   : > { %s1015_s29 = smov %s821_s8  ;;  %20 = sbr.rel (!%p18_p9) target bundleno = 5 (0x5), region = 83 }
 0x1e3   :  { %561 = vsyncpa [#allocation4], 1 }
 0x1e4   :  { %563 = vsyncpa [#allocation4 + $0x1], 1 }

</bundles_post_ra>
